<compile_context>
chip_gen: v6e
topology: v6e:2x2x1
jax: 0.10.0
libtpu: 0.0.40
codegen_flags: <defaults>
</compile_context>

<pallas_src>
import functools

import jax
import jax.numpy as jnp
from jax import lax
from jax.experimental import pallas as pl
from jax.experimental.pallas import tpu as pltpu

C_IN = 10       # Conv1d in_channels
POOL_T = 10     # AdaptiveMaxPool1d output size
FEATS = 30      # 3 branches * POOL_T = Linear in_features
KSIZES = (4, 3, 2)


def _pool_bounds(lout):
    """Exact PyTorch AdaptiveMaxPool1d(POOL_T) segment boundaries (static)."""
    return [((i * lout) // POOL_T, ((i + 1) * lout + POOL_T - 1) // POOL_T)
            for i in range(POOL_T)]


def _round_up(x, m):
    return ((x + m - 1) // m) * m


def textcnn_kernel(x_ref, wconv_ref, bvec_ref, lwt_ref, lb_ref, out_ref, *, louts):
    """One batch tile.

    x_ref    : (tb, C_IN*L)    input rows, PyTorch (c, l) flattening
    wconv_ref: (M_conv, C_IN*L) stacked Toeplitz conv weights (branches 4,3,2)
    bvec_ref : (M_conv, 1)     per-row conv bias
    lwt_ref  : (out, 30)       Linear weight (transposed)
    lb_ref   : (out, 1)        Linear bias
    out_ref  : (out, tb)       softmax probabilities, batch in lanes
    """
    # All three convolutions in ONE MXU matmul; contracting dim 1 of both
    # operands folds the input "transpose" into the MXU feed, so every tensor
    # from here on is (features, tb) = batch-in-lanes.
    dn = (((1,), (1,)), ((), ()))
    z = lax.dot_general(wconv_ref[...], x_ref[...], dn,
                        preferred_element_type=jnp.float32)          # (M_conv, tb)
    a = jnp.maximum(z + bvec_ref[...], 0.0)                          # bias + ReLU

    # AdaptiveMaxPool1d(10) per branch: static sublane-slice maxes (XLU slot).
    rows = []
    off = 0
    for lout in louts:
        for s, e in _pool_bounds(lout):
            rows.append(jnp.max(a[off + s:off + e, :], axis=0, keepdims=True))
        off += lout
    feats = jnp.concatenate(rows, axis=0)                            # (30, tb)

    # Merged Linear: one (out,30) x (30,tb) dot + bias.
    logits = jnp.dot(lwt_ref[...], feats,
                     preferred_element_type=jnp.float32) + lb_ref[...]   # (out, tb)

    # Softmax over the small sublane dim; divide on the EUP (approx reciprocal
    # + one Newton refinement -> f32-accurate, VALU cost ~2 ops on a (1,tb) row).
    m = jnp.max(logits, axis=0, keepdims=True)
    e = jnp.exp(logits - m)
    denom = jnp.sum(e, axis=0, keepdims=True)
    inv = pl.reciprocal(denom, approx=True)
    inv = inv * (2.0 - denom * inv)
    out_ref[...] = e * inv


def _conv_toeplitz(w, L):
    """w: (C_IN, k) Conv1d taps -> T (L-k+1, C_IN*L) with
    T[l, c*L + l + kk] = w[c, kk], so that T @ flat(x) == Conv1d(x)."""
    c, k = w.shape
    lout = L - k + 1
    l_idx = jnp.arange(lout)[:, None, None]
    c_idx = jnp.arange(c)[None, :, None]
    k_idx = jnp.arange(k)[None, None, :]
    rows = jnp.broadcast_to(l_idx, (lout, c, k)).reshape(-1)
    cols = (c_idx * L + l_idx + k_idx).reshape(-1)
    vals = jnp.broadcast_to(w[None].astype(jnp.float32), (lout, c, k)).reshape(-1)
    return jnp.zeros((lout, c * L), jnp.float32).at[rows, cols].set(vals)


def textcnn_forward(data, params, *, max_tb=4096):
    """data: (B, 10, L) float32 (PyTorch NCW layout) -> (B, output_size) softmax."""
    B, C, L = data.shape
    assert C == C_IN and L >= 4
    # Toeplitz conv-as-matmul weights grow O(L^2); sized for TextCNN-style short
    # sequences (tests use L = 16/20).
    assert L <= 512, "conv-as-matmul Toeplitz expansion is sized for short sequences"
    out_size = params["lw"].shape[1]
    louts = tuple(L - k + 1 for k in KSIZES)
    K = C_IN * L

    # Flat (B, C*L) view -- no host transpose; the channel/tap contraction (and
    # the implicit transpose to batch-in-lanes) happens on the MXU in-kernel.
    x2 = data.reshape(B, K).astype(jnp.float32)
    # (Optional: bf16 cast of x2/wconv here halves HBM traffic on v6e/v7x;
    #  kept f32 for exact parity with the f32 reference.)

    # Conv branches stacked into one Toeplitz matrix + per-row bias column.
    wconv = jnp.concatenate([_conv_toeplitz(params["w4"], L),
                             _conv_toeplitz(params["w3"], L),
                             _conv_toeplitz(params["w2"], L)], axis=0)      # (3L-6, K)
    bvec = jnp.concatenate(
        [jnp.full((louts[0], 1), params["b4"][0], jnp.float32),
         jnp.full((louts[1], 1), params["b3"][0], jnp.float32),
         jnp.full((louts[2], 1), params["b2"][0], jnp.float32)], axis=0)    # (3L-6, 1)
    lwt = jnp.transpose(params["lw"]).astype(jnp.float32)                   # (out, 30)
    lb = params["lb"].reshape(out_size, 1).astype(jnp.float32)

    # ---- batch-tile selection --------------------------------------------------
    # Streamed input block VMEM: 2 (double buffer) * tb * K_lanes * 4 B.  Budget
    # 8 MiB so the scoped defaults (16 MiB v5e / 32 MiB v6e,v7x) never bind;
    # floor tb to a multiple of 128 (robust to odd caller max_tb).
    k_lanes = _round_up(K, 128)
    budget = 8 << 20
    tb_cap = max(128, min(max_tb, budget // (2 * 4 * k_lanes)) // 128 * 128)
    if B < 256:
        tb, b_pad = B, B                        # single tile; block == full array dims
    else:
        half = _round_up((B + 1) // 2, 128)     # >= 2 tiles so both v7x TCs get work
        tb = min(tb_cap, half)
        b_pad = _round_up(B, tb)
        if b_pad > B:                           # zero rows -> finite softmax, sliced off
            x2 = jnp.pad(x2, ((0, b_pad - B), (0, 0)))
    grid = (b_pad // tb,)

    # Explicit VMEM limit: double-buffered input + resident weights/intermediates
    # with ~2x headroom; stays inside v7x's 64 MiB physical VMEM.
    vmem_limit = min(int(2 * (2 * tb * k_lanes * 4) + (16 << 20)), 64 << 20)

    vmem = pl.BlockSpec(memory_space=pltpu.MemorySpace.VMEM)
    kern = functools.partial(textcnn_kernel, louts=louts)

    out_t = pl.pallas_call(
        kern,
        out_shape=jax.ShapeDtypeStruct((out_size, b_pad), jnp.float32),
        grid=grid,
        in_specs=[
            pl.BlockSpec((tb, K), lambda i: (i, 0)),   # streamed batch tile
            vmem,                                      # wconv (resident, ~(3L-6) x 10L)
            vmem,                                      # bvec
            vmem,                                      # lwt
            vmem,                                      # lb
        ],
        out_specs=pl.BlockSpec((out_size, tb), lambda i: (0, i)),  # lane-dense in batch
        compiler_params=pltpu.CompilerParams(
            dimension_semantics=("parallel",),         # shard batch tiles across TCs (v7x)
            vmem_limit_bytes=vmem_limit),
    )(x2, wconv, bvec, lwt, lb)

    return jnp.transpose(out_t)[:B]                    # (B, out_size)


def init_params(key, output_size):
    """Synthetic init matching TextCNN.init_weights shapes: conv/linear weights
    ~ U(-0.5, 0.5), linear bias zero; conv biases keep a small deterministic
    nonzero init (PyTorch does not zero them)."""
    initrange = 0.5
    ks = jax.random.split(key, 7)
    w4 = jax.random.uniform(ks[0], (C_IN, 4), jnp.float32, -initrange, initrange)
    w3 = jax.random.uniform(ks[1], (C_IN, 3), jnp.float32, -initrange, initrange)
    w2 = jax.random.uniform(ks[2], (C_IN, 2), jnp.float32, -initrange, initrange)
    b4 = jax.random.uniform(ks[3], (1,), jnp.float32, -0.1, 0.1)
    b3 = jax.random.uniform(ks[4], (1,), jnp.float32, -0.1, 0.1)
    b2 = jax.random.uniform(ks[5], (1,), jnp.float32, -0.1, 0.1)
    lw = jax.random.uniform(ks[6], (FEATS, output_size), jnp.float32,
                            -initrange, initrange)     # stored as W.T of nn.Linear
    lb = jnp.zeros((output_size,), jnp.float32)
    return dict(w4=w4, b4=b4, w3=w3, b3=b3, w2=w2, b2=b2, lw=lw, lb=lb)


def textcnn_reference(data, params):
    """Pure-JAX reference (same math as the PyTorch forward) for validation."""
    def conv_relu(x, w, b, k):
        Bv, Cv, Lv = x.shape
        lout = Lv - k + 1
        acc = jnp.full((Bv, lout), b, jnp.float32)
        for kk in range(k):
            acc = acc + jnp.einsum('bcl,c->bl', x[:, :, kk:kk + lout], w[:, kk],
                                   precision=lax.Precision.HIGHEST)
        return jnp.maximum(acc, 0.0)

    def pool(v):
        lin = v.shape[1]
        cols = [jnp.max(v[:, s:e], axis=1) for s, e in _pool_bounds(lin)]
        return jnp.stack(cols, axis=1)

    p4 = pool(conv_relu(data, params["w4"], params["b4"][0], 4))
    p3 = pool(conv_relu(data, params["w3"], params["b3"][0], 3))
    p2 = pool(conv_relu(data, params["w2"], params["b2"][0], 2))
    feats = jnp.concatenate([p4, p3, p2], axis=1)
    logits = jnp.dot(feats, params["lw"],
                     precision=lax.Precision.HIGHEST) + params["lb"][None, :]
    return jax.nn.softmax(logits, axis=1)


if __name__ == "__main__":
    key = jax.random.PRNGKey(0)
    pkey, dkey, dkey2 = jax.random.split(key, 3)

    output_size = 8
    params = init_params(pkey, output_size)

    # Small single-tile case: data (B, 10, L) like PyTorch Conv1d(10, ...).
    B, L = 2, 16
    data = jax.random.normal(dkey, (B, C_IN, L), dtype=jnp.float32)
    out = jax.block_until_ready(textcnn_forward(data, params))
    ref = textcnn_reference(data, params)
    assert out.shape == (B, output_size)
    assert bool(jnp.allclose(jnp.sum(out, axis=1), 1.0, atol=1e-5))
    assert bool(jnp.allclose(out, ref, atol=1e-4, rtol=1e-4))

    # Multi-tile + padded-batch path (tb=256, grid=2, 212 zero rows sliced off).
    B2, L2 = 300, 20
    data2 = jax.random.normal(dkey2, (B2, C_IN, L2), dtype=jnp.float32)
    out2 = jax.block_until_ready(textcnn_forward(data2, params))
    ref2 = textcnn_reference(data2, params)
    assert out2.shape == (B2, output_size)
    assert bool(jnp.allclose(jnp.sum(out2, axis=1), 1.0, atol=1e-5))
    assert bool(jnp.allclose(out2, ref2, atol=1e-4, rtol=1e-4))

    print("KERNEL_OK")
</pallas_src>

<mosaic_0001>
module attributes {stable_mosaic.version = 11 : i64} {
  func.func @textcnn_kernel(%arg0: i32, %arg1: memref<2x160xf32, #tpu.memory_space<vmem>>, %arg2: memref<42x160xf32, #tpu.memory_space<vmem>>, %arg3: memref<42x1xf32, #tpu.memory_space<vmem>>, %arg4: memref<8x30xf32, #tpu.memory_space<vmem>>, %arg5: memref<8x1xf32, #tpu.memory_space<vmem>>, %arg6: memref<8x2xf32, #tpu.memory_space<vmem>>) attributes {dimension_semantics = [#tpu.dimension_semantics<parallel>], iteration_bounds = array<i64: 1>, scalar_prefetch = 0 : i64, scratch_operands = 0 : i64, tpu.core_type = #tpu.core_type<tc>, window_params = [{transform_indices = @transform_0, window_bounds = array<i64: 2, 160>}, {pipeline_mode = #tpu.pipeline_mode<synchronous>, transform_indices = @transform_1, window_bounds = array<i64: 42, 160>}, {pipeline_mode = #tpu.pipeline_mode<synchronous>, transform_indices = @transform_2, window_bounds = array<i64: 42, 1>}, {pipeline_mode = #tpu.pipeline_mode<synchronous>, transform_indices = @transform_3, window_bounds = array<i64: 8, 30>}, {pipeline_mode = #tpu.pipeline_mode<synchronous>, transform_indices = @transform_4, window_bounds = array<i64: 8, 1>}, {transform_indices = @transform_5, window_bounds = array<i64: 8, 2>}]} {
    %c0 = arith.constant 0 : index
    %c0_0 = arith.constant 0 : index
    %0 = vector.load %arg2[%c0, %c0_0] : memref<42x160xf32, #tpu.memory_space<vmem>>, vector<42x160xf32>
    %c0_1 = arith.constant 0 : index
    %c0_2 = arith.constant 0 : index
    %1 = vector.load %arg1[%c0_1, %c0_2] : memref<2x160xf32, #tpu.memory_space<vmem>>, vector<2x160xf32>
    %cst = arith.constant dense<0.000000e+00> : vector<42x2xf32>
    %2 = tpu.matmul %0, %1, %cst {dimension_numbers = #tpu.dot_dimension_numbers<[1], [1], [0], [0], [0, 0, 1, 0], [], []>} : vector<42x160xf32>, vector<2x160xf32>, vector<42x2xf32> -> vector<42x2xf32>
    %c0_3 = arith.constant 0 : index
    %c0_4 = arith.constant 0 : index
    %3 = vector.load %arg3[%c0_3, %c0_4] : memref<42x1xf32, #tpu.memory_space<vmem>>, vector<42x1xf32>
    %4 = vector.broadcast %3 : vector<42x1xf32> to vector<42x2xf32>
    %5 = arith.addf %2, %4 : vector<42x2xf32>
    %cst_5 = arith.constant 0.000000e+00 : f32
    %6 = vector.broadcast %cst_5 : f32 to vector<42x2xf32>
    %7 = arith.maximumf %5, %6 : vector<42x2xf32>
    %8 = vector.extract_strided_slice %7 {offsets = [0, 0], sizes = [2, 2], strides = [1, 1]} : vector<42x2xf32> to vector<2x2xf32>
    %cst_6 = arith.constant dense<0xFF800000> : vector<2xf32>
    %9 = vector.multi_reduction <maximumf>, %8, %cst_6 [0] : vector<2x2xf32> to vector<2xf32>
    %10 = vector.shape_cast %9 : vector<2xf32> to vector<1x2xf32>
    %11 = vector.extract_strided_slice %7 {offsets = [1, 0], sizes = [2, 2], strides = [1, 1]} : vector<42x2xf32> to vector<2x2xf32>
    %cst_7 = arith.constant dense<0xFF800000> : vector<2xf32>
    %12 = vector.multi_reduction <maximumf>, %11, %cst_7 [0] : vector<2x2xf32> to vector<2xf32>
    %13 = vector.shape_cast %12 : vector<2xf32> to vector<1x2xf32>
    %14 = vector.extract_strided_slice %7 {offsets = [2, 0], sizes = [2, 2], strides = [1, 1]} : vector<42x2xf32> to vector<2x2xf32>
    %cst_8 = arith.constant dense<0xFF800000> : vector<2xf32>
    %15 = vector.multi_reduction <maximumf>, %14, %cst_8 [0] : vector<2x2xf32> to vector<2xf32>
    %16 = vector.shape_cast %15 : vector<2xf32> to vector<1x2xf32>
    %17 = vector.extract_strided_slice %7 {offsets = [3, 0], sizes = [3, 2], strides = [1, 1]} : vector<42x2xf32> to vector<3x2xf32>
    %cst_9 = arith.constant dense<0xFF800000> : vector<2xf32>
    %18 = vector.multi_reduction <maximumf>, %17, %cst_9 [0] : vector<3x2xf32> to vector<2xf32>
    %19 = vector.shape_cast %18 : vector<2xf32> to vector<1x2xf32>
    %20 = vector.extract_strided_slice %7 {offsets = [5, 0], sizes = [2, 2], strides = [1, 1]} : vector<42x2xf32> to vector<2x2xf32>
    %cst_10 = arith.constant dense<0xFF800000> : vector<2xf32>
    %21 = vector.multi_reduction <maximumf>, %20, %cst_10 [0] : vector<2x2xf32> to vector<2xf32>
    %22 = vector.shape_cast %21 : vector<2xf32> to vector<1x2xf32>
    %23 = vector.extract_strided_slice %7 {offsets = [6, 0], sizes = [2, 2], strides = [1, 1]} : vector<42x2xf32> to vector<2x2xf32>
    %cst_11 = arith.constant dense<0xFF800000> : vector<2xf32>
    %24 = vector.multi_reduction <maximumf>, %23, %cst_11 [0] : vector<2x2xf32> to vector<2xf32>
    %25 = vector.shape_cast %24 : vector<2xf32> to vector<1x2xf32>
    %26 = vector.extract_strided_slice %7 {offsets = [7, 0], sizes = [3, 2], strides = [1, 1]} : vector<42x2xf32> to vector<3x2xf32>
    %cst_12 = arith.constant dense<0xFF800000> : vector<2xf32>
    %27 = vector.multi_reduction <maximumf>, %26, %cst_12 [0] : vector<3x2xf32> to vector<2xf32>
    %28 = vector.shape_cast %27 : vector<2xf32> to vector<1x2xf32>
    %29 = vector.extract_strided_slice %7 {offsets = [9, 0], sizes = [2, 2], strides = [1, 1]} : vector<42x2xf32> to vector<2x2xf32>
    %cst_13 = arith.constant dense<0xFF800000> : vector<2xf32>
    %30 = vector.multi_reduction <maximumf>, %29, %cst_13 [0] : vector<2x2xf32> to vector<2xf32>
    %31 = vector.shape_cast %30 : vector<2xf32> to vector<1x2xf32>
    %32 = vector.extract_strided_slice %7 {offsets = [10, 0], sizes = [2, 2], strides = [1, 1]} : vector<42x2xf32> to vector<2x2xf32>
    %cst_14 = arith.constant dense<0xFF800000> : vector<2xf32>
    %33 = vector.multi_reduction <maximumf>, %32, %cst_14 [0] : vector<2x2xf32> to vector<2xf32>
    %34 = vector.shape_cast %33 : vector<2xf32> to vector<1x2xf32>
    %35 = vector.extract_strided_slice %7 {offsets = [11, 0], sizes = [2, 2], strides = [1, 1]} : vector<42x2xf32> to vector<2x2xf32>
    %cst_15 = arith.constant dense<0xFF800000> : vector<2xf32>
    %36 = vector.multi_reduction <maximumf>, %35, %cst_15 [0] : vector<2x2xf32> to vector<2xf32>
    %37 = vector.shape_cast %36 : vector<2xf32> to vector<1x2xf32>
    %38 = vector.extract_strided_slice %7 {offsets = [13, 0], sizes = [2, 2], strides = [1, 1]} : vector<42x2xf32> to vector<2x2xf32>
    %cst_16 = arith.constant dense<0xFF800000> : vector<2xf32>
    %39 = vector.multi_reduction <maximumf>, %38, %cst_16 [0] : vector<2x2xf32> to vector<2xf32>
    %40 = vector.shape_cast %39 : vector<2xf32> to vector<1x2xf32>
    %41 = vector.extract_strided_slice %7 {offsets = [14, 0], sizes = [2, 2], strides = [1, 1]} : vector<42x2xf32> to vector<2x2xf32>
    %cst_17 = arith.constant dense<0xFF800000> : vector<2xf32>
    %42 = vector.multi_reduction <maximumf>, %41, %cst_17 [0] : vector<2x2xf32> to vector<2xf32>
    %43 = vector.shape_cast %42 : vector<2xf32> to vector<1x2xf32>
    %44 = vector.extract_strided_slice %7 {offsets = [15, 0], sizes = [3, 2], strides = [1, 1]} : vector<42x2xf32> to vector<3x2xf32>
    %cst_18 = arith.constant dense<0xFF800000> : vector<2xf32>
    %45 = vector.multi_reduction <maximumf>, %44, %cst_18 [0] : vector<3x2xf32> to vector<2xf32>
    %46 = vector.shape_cast %45 : vector<2xf32> to vector<1x2xf32>
    %47 = vector.extract_strided_slice %7 {offsets = [17, 0], sizes = [2, 2], strides = [1, 1]} : vector<42x2xf32> to vector<2x2xf32>
    %cst_19 = arith.constant dense<0xFF800000> : vector<2xf32>
    %48 = vector.multi_reduction <maximumf>, %47, %cst_19 [0] : vector<2x2xf32> to vector<2xf32>
    %49 = vector.shape_cast %48 : vector<2xf32> to vector<1x2xf32>
    %50 = vector.extract_strided_slice %7 {offsets = [18, 0], sizes = [2, 2], strides = [1, 1]} : vector<42x2xf32> to vector<2x2xf32>
    %cst_20 = arith.constant dense<0xFF800000> : vector<2xf32>
    %51 = vector.multi_reduction <maximumf>, %50, %cst_20 [0] : vector<2x2xf32> to vector<2xf32>
    %52 = vector.shape_cast %51 : vector<2xf32> to vector<1x2xf32>
    %53 = vector.extract_strided_slice %7 {offsets = [20, 0], sizes = [2, 2], strides = [1, 1]} : vector<42x2xf32> to vector<2x2xf32>
    %cst_21 = arith.constant dense<0xFF800000> : vector<2xf32>
    %54 = vector.multi_reduction <maximumf>, %53, %cst_21 [0] : vector<2x2xf32> to vector<2xf32>
    %55 = vector.shape_cast %54 : vector<2xf32> to vector<1x2xf32>
    %56 = vector.extract_strided_slice %7 {offsets = [21, 0], sizes = [2, 2], strides = [1, 1]} : vector<42x2xf32> to vector<2x2xf32>
    %cst_22 = arith.constant dense<0xFF800000> : vector<2xf32>
    %57 = vector.multi_reduction <maximumf>, %56, %cst_22 [0] : vector<2x2xf32> to vector<2xf32>
    %58 = vector.shape_cast %57 : vector<2xf32> to vector<1x2xf32>
    %59 = vector.extract_strided_slice %7 {offsets = [22, 0], sizes = [3, 2], strides = [1, 1]} : vector<42x2xf32> to vector<3x2xf32>
    %cst_23 = arith.constant dense<0xFF800000> : vector<2xf32>
    %60 = vector.multi_reduction <maximumf>, %59, %cst_23 [0] : vector<3x2xf32> to vector<2xf32>
    %61 = vector.shape_cast %60 : vector<2xf32> to vector<1x2xf32>
    %62 = vector.extract_strided_slice %7 {offsets = [24, 0], sizes = [2, 2], strides = [1, 1]} : vector<42x2xf32> to vector<2x2xf32>
    %cst_24 = arith.constant dense<0xFF800000> : vector<2xf32>
    %63 = vector.multi_reduction <maximumf>, %62, %cst_24 [0] : vector<2x2xf32> to vector<2xf32>
    %64 = vector.shape_cast %63 : vector<2xf32> to vector<1x2xf32>
    %65 = vector.extract_strided_slice %7 {offsets = [25, 0], sizes = [2, 2], strides = [1, 1]} : vector<42x2xf32> to vector<2x2xf32>
    %cst_25 = arith.constant dense<0xFF800000> : vector<2xf32>
    %66 = vector.multi_reduction <maximumf>, %65, %cst_25 [0] : vector<2x2xf32> to vector<2xf32>
    %67 = vector.shape_cast %66 : vector<2xf32> to vector<1x2xf32>
    %68 = vector.extract_strided_slice %7 {offsets = [27, 0], sizes = [2, 2], strides = [1, 1]} : vector<42x2xf32> to vector<2x2xf32>
    %cst_26 = arith.constant dense<0xFF800000> : vector<2xf32>
    %69 = vector.multi_reduction <maximumf>, %68, %cst_26 [0] : vector<2x2xf32> to vector<2xf32>
    %70 = vector.shape_cast %69 : vector<2xf32> to vector<1x2xf32>
    %71 = vector.extract_strided_slice %7 {offsets = [28, 0], sizes = [2, 2], strides = [1, 1]} : vector<42x2xf32> to vector<2x2xf32>
    %cst_27 = arith.constant dense<0xFF800000> : vector<2xf32>
    %72 = vector.multi_reduction <maximumf>, %71, %cst_27 [0] : vector<2x2xf32> to vector<2xf32>
    %73 = vector.shape_cast %72 : vector<2xf32> to vector<1x2xf32>
    %74 = vector.extract_strided_slice %7 {offsets = [30, 0], sizes = [2, 2], strides = [1, 1]} : vector<42x2xf32> to vector<2x2xf32>
    %cst_28 = arith.constant dense<0xFF800000> : vector<2xf32>
    %75 = vector.multi_reduction <maximumf>, %74, %cst_28 [0] : vector<2x2xf32> to vector<2xf32>
    %76 = vector.shape_cast %75 : vector<2xf32> to vector<1x2xf32>
    %77 = vector.extract_strided_slice %7 {offsets = [31, 0], sizes = [2, 2], strides = [1, 1]} : vector<42x2xf32> to vector<2x2xf32>
    %cst_29 = arith.constant dense<0xFF800000> : vector<2xf32>
    %78 = vector.multi_reduction <maximumf>, %77, %cst_29 [0] : vector<2x2xf32> to vector<2xf32>
    %79 = vector.shape_cast %78 : vector<2xf32> to vector<1x2xf32>
    %80 = vector.extract_strided_slice %7 {offsets = [33, 0], sizes = [2, 2], strides = [1, 1]} : vector<42x2xf32> to vector<2x2xf32>
    %cst_30 = arith.constant dense<0xFF800000> : vector<2xf32>
    %81 = vector.multi_reduction <maximumf>, %80, %cst_30 [0] : vector<2x2xf32> to vector<2xf32>
    %82 = vector.shape_cast %81 : vector<2xf32> to vector<1x2xf32>
    %83 = vector.extract_strided_slice %7 {offsets = [34, 0], sizes = [2, 2], strides = [1, 1]} : vector<42x2xf32> to vector<2x2xf32>
    %cst_31 = arith.constant dense<0xFF800000> : vector<2xf32>
    %84 = vector.multi_reduction <maximumf>, %83, %cst_31 [0] : vector<2x2xf32> to vector<2xf32>
    %85 = vector.shape_cast %84 : vector<2xf32> to vector<1x2xf32>
    %86 = vector.extract_strided_slice %7 {offsets = [36, 0], sizes = [2, 2], strides = [1, 1]} : vector<42x2xf32> to vector<2x2xf32>
    %cst_32 = arith.constant dense<0xFF800000> : vector<2xf32>
    %87 = vector.multi_reduction <maximumf>, %86, %cst_32 [0] : vector<2x2xf32> to vector<2xf32>
    %88 = vector.shape_cast %87 : vector<2xf32> to vector<1x2xf32>
    %89 = vector.extract_strided_slice %7 {offsets = [37, 0], sizes = [2, 2], strides = [1, 1]} : vector<42x2xf32> to vector<2x2xf32>
    %cst_33 = arith.constant dense<0xFF800000> : vector<2xf32>
    %90 = vector.multi_reduction <maximumf>, %89, %cst_33 [0] : vector<2x2xf32> to vector<2xf32>
    %91 = vector.shape_cast %90 : vector<2xf32> to vector<1x2xf32>
    %92 = vector.extract_strided_slice %7 {offsets = [39, 0], sizes = [2, 2], strides = [1, 1]} : vector<42x2xf32> to vector<2x2xf32>
    %cst_34 = arith.constant dense<0xFF800000> : vector<2xf32>
    %93 = vector.multi_reduction <maximumf>, %92, %cst_34 [0] : vector<2x2xf32> to vector<2xf32>
    %94 = vector.shape_cast %93 : vector<2xf32> to vector<1x2xf32>
    %95 = vector.extract_strided_slice %7 {offsets = [40, 0], sizes = [2, 2], strides = [1, 1]} : vector<42x2xf32> to vector<2x2xf32>
    %cst_35 = arith.constant dense<0xFF800000> : vector<2xf32>
    %96 = vector.multi_reduction <maximumf>, %95, %cst_35 [0] : vector<2x2xf32> to vector<2xf32>
    %97 = vector.shape_cast %96 : vector<2xf32> to vector<1x2xf32>
    %98 = tpu.concatenate %10, %13, %16, %19, %22, %25, %28, %31, %34, %37, %40, %43, %46, %49, %52, %55 in 0 : vector<1x2xf32>, vector<1x2xf32>, vector<1x2xf32>, vector<1x2xf32>, vector<1x2xf32>, vector<1x2xf32>, vector<1x2xf32>, vector<1x2xf32>, vector<1x2xf32>, vector<1x2xf32>, vector<1x2xf32>, vector<1x2xf32>, vector<1x2xf32>, vector<1x2xf32>, vector<1x2xf32>, vector<1x2xf32> -> vector<16x2xf32>
    %99 = tpu.concatenate %58, %61, %64, %67, %70, %73, %76, %79, %82, %85, %88, %91, %94, %97 in 0 : vector<1x2xf32>, vector<1x2xf32>, vector<1x2xf32>, vector<1x2xf32>, vector<1x2xf32>, vector<1x2xf32>, vector<1x2xf32>, vector<1x2xf32>, vector<1x2xf32>, vector<1x2xf32>, vector<1x2xf32>, vector<1x2xf32>, vector<1x2xf32>, vector<1x2xf32> -> vector<14x2xf32>
    %100 = tpu.concatenate %98, %99 in 0 : vector<16x2xf32>, vector<14x2xf32> -> vector<30x2xf32>
    %c0_36 = arith.constant 0 : index
    %c0_37 = arith.constant 0 : index
    %101 = vector.load %arg4[%c0_36, %c0_37] : memref<8x30xf32, #tpu.memory_space<vmem>>, vector<8x30xf32>
    %cst_38 = arith.constant dense<0.000000e+00> : vector<8x2xf32>
    %102 = tpu.matmul %101, %100, %cst_38 {dimension_numbers = #tpu.dot_dimension_numbers<[1], [0], [0], [1], [0, 0, 1, 1], [], []>} : vector<8x30xf32>, vector<30x2xf32>, vector<8x2xf32> -> vector<8x2xf32>
    %c0_39 = arith.constant 0 : index
    %c0_40 = arith.constant 0 : index
    %103 = vector.load %arg5[%c0_39, %c0_40] : memref<8x1xf32, #tpu.memory_space<vmem>>, vector<8x1xf32>
    %104 = vector.broadcast %103 : vector<8x1xf32> to vector<8x2xf32>
    %105 = arith.addf %102, %104 : vector<8x2xf32>
    %cst_41 = arith.constant dense<0xFF800000> : vector<2xf32>
    %106 = vector.multi_reduction <maximumf>, %105, %cst_41 [0] : vector<8x2xf32> to vector<2xf32>
    %107 = vector.shape_cast %106 : vector<2xf32> to vector<1x2xf32>
    %108 = vector.broadcast %107 : vector<1x2xf32> to vector<8x2xf32>
    %109 = arith.subf %105, %108 : vector<8x2xf32>
    %110 = math.exp %109 : vector<8x2xf32>
    %cst_42 = arith.constant dense<0.000000e+00> : vector<2xf32>
    %111 = vector.multi_reduction <add>, %110, %cst_42 [0] : vector<8x2xf32> to vector<2xf32>
    %112 = vector.shape_cast %111 : vector<2xf32> to vector<1x2xf32>
    %113 = tpu.reciprocal %112 {approx = true} : vector<1x2xf32> -> vector<1x2xf32>
    %114 = arith.mulf %112, %113 : vector<1x2xf32>
    %cst_43 = arith.constant 2.000000e+00 : f32
    %115 = vector.broadcast %cst_43 : f32 to vector<1x2xf32>
    %116 = arith.subf %115, %114 : vector<1x2xf32>
    %117 = arith.mulf %113, %116 : vector<1x2xf32>
    %118 = vector.broadcast %117 : vector<1x2xf32> to vector<8x2xf32>
    %119 = arith.mulf %110, %118 : vector<8x2xf32>
    %c0_44 = arith.constant 0 : index
    %c0_45 = arith.constant 0 : index
    %120 = vector.load %arg6[%c0_44, %c0_45] : memref<8x2xf32, #tpu.memory_space<vmem>>, vector<8x2xf32>
    tpu.vector_store %arg6[%c0_44, %c0_45], %119 {strides = array<i32>} : memref<8x2xf32, #tpu.memory_space<vmem>>, vector<8x2xf32>,
    return
  }
  func.func @transform_0(%arg0: i32) -> (i32, i32) {
    %c0_i32 = arith.constant 0 : i32
    %c0_i32_0 = arith.constant 0 : i32
    return %arg0, %c0_i32 : i32, i32
  }
  func.func @transform_1(%arg0: i32) -> (i32, i32) {
    %c0_i32 = arith.constant 0 : i32
    %c0_i32_0 = arith.constant 0 : i32
    %c0_i32_1 = arith.constant 0 : i32
    return %c0_i32, %c0_i32_0 : i32, i32
  }
  func.func @transform_2(%arg0: i32) -> (i32, i32) {
    %c0_i32 = arith.constant 0 : i32
    %c0_i32_0 = arith.constant 0 : i32
    %c0_i32_1 = arith.constant 0 : i32
    return %c0_i32, %c0_i32_0 : i32, i32
  }
  func.func @transform_3(%arg0: i32) -> (i32, i32) {
    %c0_i32 = arith.constant 0 : i32
    %c0_i32_0 = arith.constant 0 : i32
    %c0_i32_1 = arith.constant 0 : i32
    return %c0_i32, %c0_i32_0 : i32, i32
  }
  func.func @transform_4(%arg0: i32) -> (i32, i32) {
    %c0_i32 = arith.constant 0 : i32
    %c0_i32_0 = arith.constant 0 : i32
    %c0_i32_1 = arith.constant 0 : i32
    return %c0_i32, %c0_i32_0 : i32, i32
  }
  func.func @transform_5(%arg0: i32) -> (i32, i32) {
    %c0_i32 = arith.constant 0 : i32
    %c0_i32_0 = arith.constant 0 : i32
    return %c0_i32, %arg0 : i32, i32
  }
}

</mosaic_0001>

<bundles_post_ra>
// kernel: tpu_custom_call.1
= control target key start
LH: loop header
LB: loop body
LE: loop exit
PB: predicated region body
PF: predicated region fallthrough
CT: control target
= control target key end

     0   :  { %10 = vsyncpa [#allocation3], 0  ;;  %s653_s18 = smov [#allocation2]   ;;  %s854_s0 = inlined_call_operand.vmem [shape: f32[2,160], index: 0, kind: input, shape index: {}]   ;;  %s855_s1 = inlined_call_operand.hbm [shape: f32[42,160], index: 1, kind: input, shape index: {}]   ;;  %s856_s2 = inlined_call_operand.vmem [shape: f32[42,1], index: 2, kind: input, shape index: {}]   ;;  %s857_s3 = inlined_call_operand.vmem [shape: f32[8,30], index: 3, kind: input, shape index: {}]   ;;  %s858_s4 = inlined_call_operand.vmem [shape: f32[8,1], index: 4, kind: input, shape index: {}]   ;;  %s859_s5 = inlined_call_operand.vmem [shape: f32[8,2], index: 5, kind: output, shape index: {}]  }
   0x1   :  { %s18_s19 = sshll.u32 %s653_s18, 4  ;;  %s19_s19 = int_to_ptr.vmem [resolvable:$true] %s18_s19 }
   0x2   :  { %s639_s20 = scalar_lea.vmem %s19_s19, 1536  ;;  %p644_p1 = scmp.lt.s32.totalorder %s19_s19, %s19_s19 }
   0x3   :  { %p640_p0 = scmp.ne.s32.totalorder %s19_s19, %s639_s20  ;;  %p645_p2 = scmp.lt.s32.totalorder %s639_s20, %s639_s20 }
   0x5   :  { %p646_p3 = por %p645_p2, %p644_p1 }
   0x7   :  { %p647_p4 = pnand %p646_p3, %p640_p0 }
   0x9   :  { %650 = shalt.err (!%p647_p4)
}
   0xa   :  { %s654_s21 = smov 256   ;;  %s655_s22 = smov 16  }
   0xb   :  { %24 = dma.hbm_to_vmem [thread:$0]  %s855_s1, 1536, %s19_s19, [#allocation3], %s654_s21, %s654_s21, %s655_s22  }
   0xc   :  { %651 = dma.done.wait [#allocation3], 1536  }
   0xd   :  { %652 = vsyncadd [#allocation3], 4294965760  ;;  %v656_v0 = vmov 0   ;;  %vm93_vm0 = vcmask 261120   ;;  %v35_v2 = vld [vmem:[#allocation2 + $0x8] sm:$0xff]  ;;  %v34_v5 = vld [vmem:[#allocation2] sm:$0xff] }
   0xe   :  { %626 = vset.pattern.permute.xlu1 %v656_v0  ;;  %625 = vset.pattern.permute.xlu0 %v656_v0  ;;  %v591_v1 = vld.sshfl [vmem:[%s854_s0] sm:$0x33 pattern:$0x76325410]  ;;  %v43_v3 = vld [vmem:[#allocation2 + $0x48] sm:$0xff]  ;;  %v37_v8 = vld [vmem:[#allocation2 + $0x18] sm:$0xff] }
   0xf   :  { %v91_v4 = vcombine.high %v591_v1, %v591_v1  ;;  %593 = vmatprep.mubr.msk.f32.mxu0 %vm93_vm0, %v35_v2  ;;  %597 = vmatprep.mubr.msk.f32.mxu1 %vm93_vm0, %v43_v3  ;;  %v42_v6 = vld [vmem:[#allocation2 + $0x40] sm:$0xff]  ;;  %v45_v9 = vld [vmem:[#allocation2 + $0x58] sm:$0x3]  ;;  %v49_v10 = vld [vmem:[%s856_s2 + $0x10] sm:$0xff]  ;;  %v657_v22 = vmov 0.0   ;;  %vm658_vm1 = vmmov 0  }
  0x10   :  { %v51_v7 = vld [vmem:[%s856_s2 + $0x20] sm:$0xff]  ;;  %v52_v11 = vld [vmem:[%s856_s2 + $0x28] sm:$0x3]  ;;  %65 = vperm.xlu0 %625, %v49_v10   ;;  %v50_v12 = vld [vmem:[%s856_s2 + $0x18] sm:$0xff]  ;;  %vm332_vm2 = vcmask 13316   ;;  %vm223_vm3 = vcmask 10241  }
  0x11   :  { %592 = vmatprep.subr.msk.mxu0 %vm93_vm0, %v91_v4  ;;  %617 = vmatprep.subr.msk.mxu1 %vm93_vm0, %v91_v4  ;;  %v36_v13 = vld [vmem:[#allocation2 + $0x10] sm:$0xff]  ;;  %v39_v15 = vld [vmem:[#allocation2 + $0x28] sm:$0xff]  ;;  %v47_v16 = vld [vmem:[%s856_s2] sm:$0xff]  ;;  %vm231_vm4 = vcmask 11266   ;;  %vm247_vm5 = vcmask 14341   ;;  %vm215_vm6 = vcmask 9216  }
  0x12   :  { %145 = vmatpush1.xpose.msra.mxu0 %v591_v1  ;;  %618 = vmatpush1.xpose.msra.mxu1 %v591_v1  ;;  %v44_v14 = vld [vmem:[#allocation2 + $0x50] sm:$0x3]  ;;  %v48_v17 = vld [vmem:[%s856_s2 + $0x8] sm:$0xff]  ;;  %v38_v18 = vld [vmem:[#allocation2 + $0x20] sm:$0xff]  ;;  %vm263_vm7 = vcmask 15367   ;;  %vm348_vm8 = vcmask 8192  }
  0x13   :  { %75 = vperm.xlu1 %626, %v51_v7   ;;  %v41_v19 = vld [vmem:[#allocation2 + $0x38] sm:$0xff]  ;;  %v479_v20 = vld [vmem:[%s858_s4] sm:$0xff]  ;;  %v40_v21 = vld [vmem:[#allocation2 + $0x30] sm:$0xff]  ;;  %606 = vmatprep.subr.mxu1 %v657_v22  ;;  %vm255_vm9 = vcmask 15366   ;;  %vm287_vm10 = vcmask 12291   ;;  %vm445_vm11 = vcmask 1040384  }
  0x14   :  { %70 = vperm.xlu0 %625, %v50_v12   ;;  %vm447_vm12 = vcmask 1041408   ;;  %vm449_vm13 = vcmask 1042432   ;;  %vm451_vm14 = vcmask 1043456   ;;  %vm453_vm15 = vcmask 1044480  }
  0x15   :  { %179 = vmatmul.mubr.f32.vlgmr.msra.gmra.mxu0 %v34_v5  ;;  %199 = vmatmul.mubr.f32.vlgmr.msra.gmra.mxu1 %v42_v6 }
  0x16   :  { %594 = vmatprep.mubr.msk.f32.mxu0 %vm93_vm0, %v37_v8  ;;  %598 = vmatprep.mubr.msk.f32.mxu1 %vm93_vm0, %v45_v9 }
  0x17   :  { %80 = vperm.xlu1 %626, %v52_v11  }
  0x18   :  { %60 = vperm.xlu0 %625, %v48_v17  }
  0x19   :  { %184 = vmatmul.mubr.f32.gmra.mxu0 %v36_v13  ;;  %204 = vmatmul.mubr.f32.gmra.mxu1 %v44_v14 }
  0x1a   :  { %595 = vmatprep.mubr.msk.f32.mxu0 %vm93_vm0, %v39_v15  ;;  %614 = vmatprep.mubr.msk.f32.mxu1 %vm658_vm1, %v657_v22  ;;  %vm457_vm1 = vcmask 1046528  }
  0x1b   :  { %55 = vperm.xlu1 %626, %v47_v16  }
  0x1c   :  { %482 = vperm.xlu0 %625, %v479_v20  }
  0x1d   :  { %189 = vmatmul.mubr.f32.gmra.mxu0 %v38_v18 }
  0x1e   :  { %596 = vmatprep.mubr.msk.f32.mxu0 %vm93_vm0, %v41_v19  ;;  %vm455_vm0 = vcmask 1045504  }
  0x21   :  { %194 = vmatmul.mubr.f32.gmra.mxu0 %v40_v21 }
  0x8b   :  { %v66_v24 = vpop.permute.xlu0 %65 }
  0x8e   :  { %v76_v23 = vpop.permute.xlu1 %75 }
  0x8f   :  { %v71_v26 = vpop.permute.xlu0 %70 }
  0x92   :  { %v81_v25 = vpop.permute.xlu1 %80 }
  0x93   :  { %v61_v36 = vpop.permute.xlu0 %60 }
  0x96   :  { %v56_v27 = vpop.permute.xlu1 %55 }
  0xd5   :  { %v180_v28 = vpop.f32.mrf.mxu0  ;;  %v200_v29 = vpop.f32.mrf.mxu1 }
  0xd6   :  { %v181_v30 = vadd.f32 %v180_v28, %v56_v27  ;;  %v201_v31 = vadd.f32 %v200_v29, %v76_v23 }
  0xd7   :  { %v182_v32 = vpop.f32.mrf.mxu0  ;;  %v202_v33 = vpop.f32.mrf.mxu1 }
  0xd8   :  { %v726_v34 = vmax.f32 %v181_v30, 0.0  ;;  %v213_v35 = vmax.f32 %v201_v31, 0.0 }
  0xd9   :  { %v185_v37 = vpop.f32.mrf.mxu0  ;;  %v205_v38 = vpop.f32.mrf.mxu1 }
  0xda   :  { %v401_v39 = vsel %vm223_vm3, %v213_v35, -inf  ;;  %v408_v40 = vsel %vm231_vm4, %v213_v35, -inf  ;;  %v415_v41 = vsel %vm332_vm2, %v213_v35, -inf  ;;  %v732_v42 = vsel %vm247_vm5, %v213_v35, -inf }
  0xdb   :  { %v402_v43 = vrot.slane %v401_v39, 4  ;;  %v409_v44 = vrot.slane %v408_v40, 4  ;;  %v416_v45 = vrot.slane %v415_v41, 4  ;;  %v423_v46 = vrot.slane %v732_v42, 4  ;;  %v187_v47 = vpop.f32.mrf.mxu0  ;;  %v207_v48 = vpop.f32.mrf.mxu1 }
  0xdc   :  { %v186_v49 = vadd.f32 %v185_v37, %v61_v36  ;;  %v206_v50 = vadd.f32 %v205_v38, %v81_v25  ;;  %v216_v51 = vsel %vm215_vm6, %v726_v34, -inf  ;;  %v264_v52 = vsel %vm263_vm7, %v726_v34, -inf }
  0xdd   :  { %v403_v53 = vmax.f32 %v401_v39, %v402_v43  ;;  %v410_v54 = vmax.f32 %v408_v40, %v409_v44  ;;  %v417_v55 = vmax.f32 %v415_v41, %v416_v45  ;;  %v217_v56 = vrot.slane %v216_v51, 4  ;;  %v190_v57 = vpop.f32.mrf.mxu0 }
  0xde   :  { %v739_v58 = vmax.f32 %v186_v49, 0.0  ;;  %v214_v59 = vmax.f32 %v206_v50, 0.0  ;;  %v742_v60 = vsel %vm348_vm8, %v213_v35, -inf  ;;  %v429_v61 = vsel %vm263_vm7, %v213_v35, -inf }
  0xdf   :  { %v404_v62 = vrot.slane %v403_v53, 2  ;;  %v411_v63 = vrot.slane %v410_v54, 2  ;;  %v218_v0 = vmax.f32 %v216_v51, %v217_v56  ;;  %v191_v1 = vadd.f32 %v190_v57, %v66_v24  ;;  %v192_v2 = vpop.f32.mrf.mxu0 }
  0xe0   :  { %v747_v3 = vsel %vm231_vm4, %v739_v58, -inf  ;;  %v265_v4 = vsel %vm215_vm6, %v739_v58, -inf  ;;  %v309_v5 = vsel %vm263_vm7, %v739_v58, -inf  ;;  %v430_v6 = vsel %vm348_vm8, %v214_v59, -inf }
  0xe1   :  { %v281_v7 = vrot.slane %v747_v3, 4  ;;  %v219_v8 = vrot.slane %v218_v0, 2  ;;  %v755_v9 = vmax.f32 %v264_v52, %v265_v4  ;;  %v431_v10 = vmax.f32 %v429_v61, %v430_v6  ;;  %v195_v11 = vpop.f32.mrf.mxu0 }
  0xe2   :  { %v438_v12 = vsel %vm215_vm6, %v214_v59, -inf  ;;  %v758_v13 = vmax.f32 %v191_v1, 0.0  ;;  %v196_v14 = vadd.f32 %v195_v11, %v71_v26  ;;  %v405_v15 = vmax.f32 %v403_v53, %v404_v62 }
  0xe3   :  { %v220_v16 = vmax.f32 %v218_v0, %v219_v8  ;;  %v267_v17 = vrot.slane %v755_v9, 4  ;;  %v432_v18 = vrot.slane %v431_v10, 4  ;;  %v439_v19 = vrot.slane %v438_v12, 4  ;;  %v197_v20 = vpop.f32.mrf.mxu0 }
  0xe4   :  { %v310_v21 = vsel %vm215_vm6, %v758_v13, -inf  ;;  %v340_v23 = vsel %vm247_vm5, %v758_v13, -inf  ;;  %v347_v24 = vsel %vm255_vm9, %v758_v13, -inf  ;;  %v212_v25 = vmax.f32 %v196_v14, 0.0 }
  0xe5   :  { %v221_v27 = vrot.slane %v220_v16, 1  ;;  %v433_v26 = vmax.f32 %v431_v10, %v432_v18  ;;  %v440_v28 = vmax.f32 %v438_v12, %v439_v19  ;;  %v767_v29 = vmax.f32 %v309_v5, %v310_v21 }
  0xe6   :  { %v341_v30 = vrot.slane %v340_v23, 4  ;;  %v349_v31 = vsel %vm348_vm8, %v212_v25, -inf  ;;  %v406_v32 = vrot.slane %v405_v15, 1  ;;  %v412_v33 = vmax.f32 %v410_v54, %v411_v63 }
  0xe7   :  { %v770_v35 = vmax.f32 %v220_v16, %v221_v27  ;;  %v434_v36 = vrot.slane %v433_v26, 2  ;;  %v441_v37 = vrot.slane %v440_v28, 2  ;;  %v350_v38 = vmax.f32 %v347_v24, %v349_v31 }
  0xe8   :  { %v342_v39 = vmax.f32 %v340_v23, %v341_v30  ;;  %v407_v40 = vmax.f32 %v405_v15, %v406_v32  ;;  %v413_v41 = vrot.slane %v412_v33, 1  ;;  %v418_v43 = vrot.slane %v417_v55, 2 }
  0xe9   :  { %v435_v44 = vmax.f32 %v433_v26, %v434_v36  ;;  %v442_v45 = vmax.f32 %v440_v28, %v441_v37  ;;  %v424_v47 = vmax.f32 %v732_v42, %v423_v46  ;;  %v288_v48 = vsel %vm287_vm10, %v739_v58, -inf }
  0xea   :  { %v343_v49 = vrot.slane %v342_v39, 2  ;;  %v414_v50 = vmax.f32 %v412_v33, %v413_v41  ;;  %v419_v51 = vmax.f32 %v417_v55, %v418_v43  ;;  %v289_v52 = vrot.slane %v288_v48, 4 }
  0xeb   :  { %v436_v53 = vrot.slane %v435_v44, 1  ;;  %v443_v54 = vrot.slane %v442_v45, 1  ;;  %v425_v56 = vrot.slane %v424_v47, 2  ;;  %v351_v57 = vrot.slane %v350_v38, 4 }
  0xec   :  { %v344_v59 = vmax.f32 %v342_v39, %v343_v49  ;;  %v420_v61 = vrot.slane %v419_v51, 1  ;;  %v473_v62 = vsel %vm445_vm11, %v407_v40, %v414_v50  ;;  %v290_v63 = vmax.f32 %v288_v48, %v289_v52 }
  0xed   :  { %v437_v42 = vmax.f32 %v435_v44, %v436_v53  ;;  %v444_v46 = vmax.f32 %v442_v45, %v443_v54  ;;  %v426_v0 = vmax.f32 %v424_v47, %v425_v56  ;;  %v352_v1 = vmax.f32 %v350_v38, %v351_v57 }
  0xee   :  { %v421_v2 = vmax.f32 %v419_v51, %v420_v61  ;;  %v291_v55 = vrot.slane %v290_v63, 2  ;;  %v345_v4 = vrot.slane %v344_v59, 1  ;;  %v357_v5 = vsel %vm215_vm6, %v212_v25, -inf }
  0xef   :  { %v427_v6 = vrot.slane %v426_v0, 1  ;;  %v353_v8 = vrot.slane %v352_v1, 2  ;;  %v358_v10 = vrot.slane %v357_v5, 4  ;;  %v364_v11 = vsel %vm223_vm3, %v212_v25, -inf }
  0xf0   :  { %v474_v12 = vsel %vm447_vm12, %v473_v62, %v421_v2  ;;  %v346_v14 = vmax.f32 %v344_v59, %v345_v4  ;;  %v365_v15 = vrot.slane %v364_v11, 4  ;;  %v371_v16 = vsel %vm287_vm10, %v212_v25, -inf }
  0xf1   :  { %v428_v18 = vmax.f32 %v426_v0, %v427_v6  ;;  %v354_v19 = vmax.f32 %v352_v1, %v353_v8  ;;  %v359_v20 = vmax.f32 %v357_v5, %v358_v10  ;;  %v372_v21 = vrot.slane %v371_v16, 4 }
  0xf2   :  { %v366_v23 = vmax.f32 %v364_v11, %v365_v15  ;;  %v378_v24 = vsel %vm332_vm2, %v212_v25, -inf  ;;  %v385_v27 = vsel %vm255_vm9, %v212_v25, -inf  ;;  %v392_v26 = vsel %vm263_vm7, %v212_v25, -inf }
  0xf3   :  { %v475_v28 = vsel %vm449_vm13, %v474_v12, %v428_v18  ;;  %v355_v30 = vrot.slane %v354_v19, 1  ;;  %v360_v31 = vrot.slane %v359_v20, 2  ;;  %v373_v32 = vmax.f32 %v371_v16, %v372_v21 }
  0xf4   :  { %v476_v33 = vsel %vm451_vm14, %v475_v28, %v437_v42  ;;  %v367_v36 = vrot.slane %v366_v23, 2  ;;  %v379_v37 = vrot.slane %v378_v24, 4  ;;  %v386_v38 = vrot.slane %v385_v27, 4 }
  0xf5   :  { %v477_v39 = vsel %vm453_vm15, %v476_v33, %v444_v46  ;;  %v356_v40 = vmax.f32 %v354_v19, %v355_v30  ;;  %v361_v41 = vmax.f32 %v359_v20, %v360_v31  ;;  %v374_v43 = vrot.slane %v373_v32, 2 }
  0xf6   :  { %607 = vmatpush3.msk.msra.mxu1 %vm455_vm0, %v477_v39  ;;  %v368_v44 = vmax.f32 %v366_v23, %v367_v36  ;;  %v380_v45 = vmax.f32 %v378_v24, %v379_v37  ;;  %v387_v25 = vmax.f32 %v385_v27, %v386_v38  ;;  %v394_v47 = vmax.f32 %v392_v26, %v742_v60 }
  0xf7   :  { %608 = vmatprep.subr.mxu1 %v657_v22  ;;  %v362_v48 = vrot.slane %v361_v41, 1  ;;  %v375_v49 = vmax.f32 %v373_v32, %v374_v43  ;;  %v466_v50 = vsel %vm445_vm11, %v346_v14, %v356_v40  ;;  %v282_v51 = vmax.f32 %v747_v3, %v281_v7 }
  0xf8   :  { %v369_v52 = vrot.slane %v368_v44, 1  ;;  %v381_v53 = vrot.slane %v380_v45, 2  ;;  %v388_v54 = vrot.slane %v387_v25, 2  ;;  %v395_v56 = vrot.slane %v394_v47, 4 }
  0xf9   :  { %v363_v57 = vmax.f32 %v361_v41, %v362_v48  ;;  %v376_v59 = vrot.slane %v375_v49, 1  ;;  %v283_v61 = vrot.slane %v282_v51, 2  ;;  %v292_v62 = vmax.f32 %v290_v63, %v291_v55 }
  0xfa   :  { %v370_v42 = vmax.f32 %v368_v44, %v369_v52  ;;  %v382_v60 = vmax.f32 %v380_v45, %v381_v53  ;;  %v389_v46 = vmax.f32 %v387_v25, %v388_v54  ;;  %v396_v0 = vmax.f32 %v394_v47, %v395_v56 }
  0xfb   :  { %v377_v1 = vmax.f32 %v375_v49, %v376_v59  ;;  %v467_v2 = vsel %vm447_vm12, %v466_v50, %v363_v57  ;;  %v284_v4 = vmax.f32 %v282_v51, %v283_v61  ;;  %v293_v5 = vrot.slane %v292_v62, 1 }
  0xfc   :  { %v383_v6 = vrot.slane %v382_v60, 1  ;;  %v390_v3 = vrot.slane %v389_v46, 1  ;;  %v397_v7 = vrot.slane %v396_v0, 2  ;;  %v468_v8 = vsel %vm449_vm13, %v467_v2, %v370_v42 }
  0xfd   :  { %v469_v10 = vsel %vm451_vm14, %v468_v8, %v377_v1  ;;  %v285_v11 = vrot.slane %v284_v4, 1  ;;  %v294_v12 = vmax.f32 %v292_v62, %v293_v5  ;;  %v295_v63 = vsel %vm247_vm5, %v739_v58, -inf }
  0xfe   :  { %v384_v55 = vmax.f32 %v382_v60, %v383_v6  ;;  %v391_v14 = vmax.f32 %v389_v46, %v390_v3  ;;  %v398_v15 = vmax.f32 %v396_v0, %v397_v7  ;;  %v296_v16 = vrot.slane %v295_v63, 4 }
  0xff   :  { %v286_v18 = vmax.f32 %v284_v4, %v285_v11  ;;  %v302_v19 = vsel %vm255_vm9, %v739_v58, -inf  ;;  %v312_v20 = vrot.slane %v767_v29, 4  ;;  %v318_v21 = vsel %vm223_vm3, %v758_v13, -inf }
 0x100   :  { %v399_v23 = vrot.slane %v398_v15, 1  ;;  %v470_v24 = vsel %vm453_vm15, %v469_v10, %v384_v55  ;;  %v297_v27 = vmax.f32 %v295_v63, %v296_v16  ;;  %v303_v26 = vrot.slane %v302_v19, 4 }
 0x101   :  { %vm239_vm6 = vcmask 13315   ;;  %v471_v28 = vsel %vm455_vm0, %v470_v24, %v391_v14  ;;  %v313_v30 = vmax.f32 %v767_v29, %v312_v20  ;;  %v319_v31 = vrot.slane %v318_v21, 4 }
 0x102   :  { %v325_v32 = vsel %vm231_vm4, %v758_v13, -inf  ;;  %v400_v33 = vmax.f32 %v398_v15, %v399_v23  ;;  %v298_v36 = vrot.slane %v297_v27, 2  ;;  %v304_v37 = vmax.f32 %v302_v19, %v303_v26 }
 0x103   :  { %v326_v38 = vrot.slane %v325_v32, 4  ;;  %v314_v39 = vrot.slane %v313_v30, 2  ;;  %v320_v40 = vmax.f32 %v318_v21, %v319_v31  ;;  %v333_v41 = vsel %vm332_vm2, %v758_v13, -inf }
 0x104   :  { %v459_v43 = vsel %vm445_vm11, %v286_v18, %v294_v12  ;;  %v472_v44 = vsel %vm457_vm1, %v471_v28, %v400_v33  ;;  %v299_v45 = vmax.f32 %v297_v27, %v298_v36  ;;  %v305_v25 = vrot.slane %v304_v37, 2 }
 0x105   :  { %v327_v29 = vmax.f32 %v325_v32, %v326_v38  ;;  %609 = vmatpush3.msra.mxu1 %v472_v44  ;;  %v315_v47 = vmax.f32 %v313_v30, %v314_v39  ;;  %v321_v48 = vrot.slane %v320_v40, 2  ;;  %v334_v49 = vrot.slane %v333_v41, 4 }
 0x106   :  { %v224_v50 = vsel %vm223_vm3, %v726_v34, -inf  ;;  %610 = vmatprep.subr.mxu1 %v657_v22  ;;  %v300_v51 = vrot.slane %v299_v45, 1  ;;  %v306_v52 = vmax.f32 %v304_v37, %v305_v25  ;;  %v232_v59 = vsel %vm231_vm4, %v726_v34, -inf }
 0x107   :  { %v328_v53 = vrot.slane %v327_v29, 2  ;;  %v225_v13 = vrot.slane %v224_v50, 4  ;;  %v316_v54 = vrot.slane %v315_v47, 1  ;;  %v322_v56 = vmax.f32 %v320_v40, %v321_v48 }
 0x108   :  { %v335_v57 = vmax.f32 %v333_v41, %v334_v49  ;;  %v301_v61 = vmax.f32 %v299_v45, %v300_v51  ;;  %v307_v62 = vrot.slane %v306_v52, 1  ;;  %v233_v2 = vrot.slane %v232_v59, 4 }
 0x109   :  { %v329_v42 = vmax.f32 %v327_v29, %v328_v53  ;;  %v226_v60 = vmax.f32 %v224_v50, %v225_v13  ;;  %v317_v46 = vmax.f32 %v315_v47, %v316_v54  ;;  %v323_v0 = vrot.slane %v322_v56, 1 }
 0x10a   :  { %v336_v1 = vrot.slane %v335_v57, 2  ;;  %v308_v4 = vmax.f32 %v306_v52, %v307_v62  ;;  %v460_v6 = vsel %vm447_vm12, %v459_v43, %v301_v61  ;;  %v234_v10 = vmax.f32 %v232_v59, %v233_v2  ;;  %v483_v2 = vpop.permute.xlu0 %482 }
 0x10b   :  { %v330_v5 = vrot.slane %v329_v42, 1  ;;  %v227_v3 = vrot.slane %v226_v60, 2  ;;  %v324_v7 = vmax.f32 %v322_v56, %v323_v0  ;;  %v240_v11 = vsel %vm239_vm6, %v726_v34, -inf  ;;  %v478_v0 = vld [vmem:[%s857_s3] sm:$0xff] }
 0x10c   :  { %v337_v8 = vmax.f32 %v335_v57, %v336_v1  ;;  %v461_v63 = vsel %vm449_vm13, %v460_v6, %v308_v4  ;;  %v241_v14 = vrot.slane %v240_v11, 4  ;;  %v235_v18 = vrot.slane %v234_v10, 2 }
 0x10d   :  { %v331_v12 = vmax.f32 %v329_v42, %v330_v5  ;;  %v228_v55 = vmax.f32 %v226_v60, %v227_v3  ;;  %v462_v16 = vsel %vm451_vm14, %v461_v63, %v317_v46  ;;  %v248_v19 = vsel %vm247_vm5, %v726_v34, -inf }
 0x10e   :  { %v338_v15 = vrot.slane %v337_v8, 1  ;;  %v463_v20 = vsel %vm453_vm15, %v462_v16, %v324_v7  ;;  %v242_v23 = vmax.f32 %v240_v11, %v241_v14  ;;  %v249_v24 = vrot.slane %v248_v19, 4 }
 0x10f   :  { %v229_v21 = vrot.slane %v228_v55, 1  ;;  %v464_v26 = vsel %vm455_vm0, %v463_v20, %v331_v12  ;;  %v236_v28 = vmax.f32 %v234_v10, %v235_v18  ;;  %v256_v30 = vsel %vm255_vm9, %v726_v34, -inf }
 0x110   :  { %v339_v27 = vmax.f32 %v337_v8, %v338_v15  ;;  %v243_v32 = vrot.slane %v242_v23, 2  ;;  %v250_v33 = vmax.f32 %v248_v19, %v249_v24  ;;  %v257_v36 = vrot.slane %v256_v30, 4 }
 0x111   :  { %v230_v31 = vmax.f32 %v228_v55, %v229_v21  ;;  %v237_v38 = vrot.slane %v236_v28, 1  ;;  %v268_v39 = vmax.f32 %v755_v9, %v267_v17  ;;  %v273_v40 = vsel %vm223_vm3, %v739_v58, -inf }
 0x112   :  { %v465_v37 = vsel %vm457_vm1, %v464_v26, %v339_v27  ;;  %v244_v41 = vmax.f32 %v242_v23, %v243_v32  ;;  %v251_v43 = vrot.slane %v250_v33, 2  ;;  %v258_v44 = vmax.f32 %v256_v30, %v257_v36 }
 0x113   :  { %611 = vmatpush3.msra.mxu1 %v465_v37  ;;  %v274_v45 = vrot.slane %v273_v40, 4  ;;  %v238_v34 = vmax.f32 %v236_v28, %v237_v38  ;;  %v269_v25 = vrot.slane %v268_v39, 2  ;;  %v446_v29 = vsel %vm445_vm11, %v770_v35, %v230_v31 }
 0x114   :  { %612 = vmatprep.subr.mxu1 %v657_v22  ;;  %v245_v47 = vrot.slane %v244_v41, 1  ;;  %v252_v48 = vmax.f32 %v250_v33, %v251_v43  ;;  %v259_v49 = vrot.slane %v258_v44, 2  ;;  %vm485_vm2 = vcmask 244736  }
 0x115   :  { %v275_v50 = vmax.f32 %v273_v40, %v274_v45  ;;  %v270_v9 = vmax.f32 %v268_v39, %v269_v25  ;;  %v448_v17 = vsel %vm447_vm12, %v446_v29, %v238_v34  ;;  %vm562_vm3 = vcmask 15360  }
 0x116   :  { %v246_v58 = vmax.f32 %v244_v41, %v245_v47  ;;  %v253_v51 = vrot.slane %v252_v48, 1  ;;  %v260_v52 = vmax.f32 %v258_v44, %v259_v49 }
 0x117   :  { %v276_v53 = vrot.slane %v275_v50, 2  ;;  %v271_v13 = vrot.slane %v270_v9, 1 }
 0x118   :  { %v254_v54 = vmax.f32 %v252_v48, %v253_v51  ;;  %v261_v56 = vrot.slane %v260_v52, 1  ;;  %v450_v57 = vsel %vm449_vm13, %v448_v17, %v246_v58 }
 0x119   :  { %v277_v22 = vmax.f32 %v275_v50, %v276_v53  ;;  %v272_v59 = vmax.f32 %v270_v9, %v271_v13 }
 0x11a   :  { %v262_v61 = vmax.f32 %v260_v52, %v261_v56  ;;  %v452_v62 = vsel %vm451_vm14, %v450_v57, %v254_v54 }
 0x11b   :  { %v278_v35 = vrot.slane %v277_v22, 1 }
 0x11c   :  { %v454_v60 = vsel %vm453_vm15, %v452_v62, %v262_v61 }
 0x11d   :  { %v279_v42 = vmax.f32 %v277_v22, %v278_v35  ;;  %v456_v46 = vsel %vm455_vm0, %v454_v60, %v272_v59 }
 0x11f   :  { %v458_v1 = vsel %vm457_vm1, %v456_v46, %v279_v42 }
 0x120   :  { %613 = vmatpush3.msra.mxu1 %v458_v1 }
 0x121   :  { %615 = vmatmul.mubr.msk.f32.vlgmr.msra.gmra.mxu1 %vm485_vm2, %v478_v0 }
 0x1e1   :  { %v558_v4 = vpop.f32.mrf.mxu1 }
 0x1e2   :  { %v559_v5 = vadd.f32 %v558_v4, %v483_v2 }
 0x1e3   :  { %v616_v6 = vpop.f32.mrf.mxu1 }
 0x1e4   :  { %v563_v3 = vsel %vm562_vm3, %v559_v5, -inf }
 0x1e5   :  { %v564_v7 = vrot.slane %v563_v3, 4 }
 0x1e7   :  { %v565_v8 = vmax.f32 %v563_v3, %v564_v7 }
 0x1e9   :  { %v566_v10 = vrot.slane %v565_v8, 2 }
 0x1eb   :  { %v567_v11 = vmax.f32 %v565_v8, %v566_v10 }
 0x1ed   :  { %v568_v12 = vrot.slane %v567_v11, 1 }
 0x1ef   :  { %v569_v63 = vmax.f32 %v567_v11, %v568_v12 }
 0x1f1   :  { %v570_v55 = vsub.f32 %v559_v5, %v569_v63 }
 0x1f3   :  { %v571_v14 = vmul.f32 1.442695, %v570_v55 }
 0x1f5   :  { %627 = vpow2.f32 %v571_v14 }
 0x202   :  { %v628_v15 = vpop.eup %627 }
 0x203   :  { %v573_v16 = vsel %vm562_vm3, %v628_v15, 0.0 }
 0x204   :  { %v574_v18 = vrot.slane %v573_v16, 4 }
 0x206   :  { %v575_v19 = vadd.f32 %v574_v18, %v573_v16 }
 0x208   :  { %v576_v20 = vrot.slane %v575_v19, 2 }
 0x20a   :  { %v577_v21 = vadd.f32 %v576_v20, %v575_v19 }
 0x20c   :  { %v578_v23 = vrot.slane %v577_v21, 1 }
 0x20e   :  { %v579_v24 = vadd.f32 %v578_v23, %v577_v21 }
 0x210   :  { %629 = vrcp.f32 %v579_v24 }
 0x21d   :  { %v630_v27 = vpop.eup %629 }
 0x21e   :  { %v581_v26 = vmul.f32 %v630_v27, %v579_v24 }
 0x220   :  { %v582_v28 = vsub.f32 2.0, %v581_v26 }
 0x222   :  { %v583_v30 = vmul.f32 %v630_v27, %v582_v28 }
 0x224   :  { %v584_v31 = vmul.f32 %v628_v15, %v583_v30 }
 0x226   :  { %585 = vst.msk [vmem:[%s859_s5] sm:$0xff] %vm562_vm3, %v584_v31 }
 0x227   :  { %590 = vsyncpa [#allocation3], 1 }

</bundles_post_ra>
